<compile_context>
chip_gen: v7x
topology: tpu7x:2x2x1
jax: 0.10.0
libtpu: 0.0.40
codegen_flags: <defaults>
</compile_context>

<pallas_src>
import functools
import math

import jax
import jax.numpy as jnp
import numpy as np
from jax.experimental import pallas as pl
from jax.experimental.pallas import tpu as pltpu

_LANES = 128
_SUBLANES = 8


def _round_up(x: int, m: int) -> int:
    return ((x + m - 1) // m) * m


def _sublane_align(*dtypes) -> int:
    """Row-tile alignment so blocks line up with packed (sublane) tiling."""
    min_bytes = min(jnp.dtype(d).itemsize for d in dtypes)
    return max(_SUBLANES, 32 // max(1, min_bytes))   # f32->8, bf16->16, i8->32


def _choose_row_tile(rows: int, requested: int, align: int) -> int:
    tile = _round_up(max(1, min(requested, rows)), align)
    if rows > align:
        # v7x megacore: keep >= 2 grid steps so the "parallel" axis feeds
        # both TensorCores (prefer 2 blocks over one oversized block).
        tile = min(tile, _round_up(pl.cdiv(rows, 2), align))
    return max(tile, align)


def _focal_bce_kernel(x_ref, t_ref, out_ref, *,
                      alpha: float, gamma: float, ignore_half_labels: bool,
                      valid_rows: int, row_tile: int):
    # Inputs may be bf16/f16 upstream; upcast in-register (keeps v5e happy).
    p = x_ref[...].astype(jnp.float32)
    t = t_ref[...].astype(jnp.float32)

    one_minus_p = 1.0 - p
    one_minus_t = 1.0 - t

    # PyTorch BCELoss clamps log terms at -100.
    log_p = jnp.maximum(jnp.log(p), -100.0)
    log_1mp = jnp.maximum(jnp.log(one_minus_p), -100.0)
    # neg_bce = -bce ; the sign is folded into the focal weight below
    # (saves one mul + one negate per element vs. the naive form).
    neg_bce = log_1mp + t * (log_p - log_1mp)

    if gamma == 2.0:
        pow_1mp = one_minus_p * one_minus_p
        pow_p = p * p
    elif gamma == 1.0:
        pow_1mp = one_minus_p
        pow_p = p
    else:
        # Reuse the already-clamped logs instead of jnp.power (saves 2 EUP
        # logs/elem).  At p exactly 0/1 this gives exp(-100*gamma) ~ 0
        # instead of an exact 0; the term is multiplied by the (also
        # clamped) bce so the difference is negligible.
        pow_1mp = jnp.exp(gamma * log_1mp)
        pow_p = jnp.exp(gamma * log_p)

    # weight = -(t*alpha*(1-p)^g + (1-t)*p^g)  ->  loss = weight * (-bce)
    weight = t * ((-alpha) * pow_1mp) - one_minus_t * pow_p
    if ignore_half_labels:
        weight = jnp.where(t == 0.5, 0.0, weight)   # single select, no cast+mul
    loss = weight * neg_bce

    # Ragged last grid step: rows past the true extent hold garbage (possibly
    # NaN after the logs) -- select them to 0.  Only emitted when an overhang
    # exists at compile time.
    if valid_rows % row_tile != 0:
        base = pl.program_id(0) * row_tile
        rid = base + jax.lax.broadcasted_iota(jnp.int32, (row_tile, 1), 0)
        loss = jnp.where(rid < valid_rows, loss, 0.0)

    # Fold the (row_tile, 128) tile into one (8,128) vreg-shaped partial sum
    # with a balanced halving tree (pure VPU vadds, log depth, no carried
    # scalar, no cross-lane reduce).  Final reduction happens in the wrapper.
    acc = loss.reshape(row_tile // _SUBLANES, _SUBLANES, _LANES)
    while acc.shape[0] > 1 and acc.shape[0] % 2 == 0:
        half = acc.shape[0] // 2
        acc = acc[:half] + acc[half:]
    out_ref[...] = acc.sum(axis=0) if acc.shape[0] > 1 else acc[0]


def focal_loss_bce(inputs: jax.Array, targets: jax.Array, *,
                   alpha: float = 0.25, gamma: float = 2.0,
                   ignore_half_labels: bool = False,
                   row_tile: int = 4096) -> jax.Array:
    """Scalar mean focal-BCE loss (matches FocalLossBCE.forward).

    Works for arbitrary input shapes/dtypes; elements are flattened and
    lane-packed into a (rows, 128) slab.  Narrow dtypes (bf16) are passed
    through unchanged and upcast inside the kernel.
    """
    assert inputs.shape == targets.shape
    total_n = math.prod(inputs.shape)
    assert total_n > 0

    x = inputs.reshape(-1)   # free (metadata) reshape for contiguous inputs
    t = targets.reshape(-1)

    tail = total_n % _LANES
    if tail:
        # TODO(synk): this lane-alignment pad (<=127 zeros, p=0/t=0 -> loss 0)
        # still materializes a full copy of both inputs; a 1D-block kernel or
        # allow_input_fusion could remove it.  The lane-aligned case (the
        # common one) pays no copy at all.
        x = jnp.pad(x, (0, _LANES - tail))
        t = jnp.pad(t, (0, _LANES - tail))
    rows = x.shape[0] // _LANES          # == ceil(total_n / 128)
    x = x.reshape(rows, _LANES)          # free
    t = t.reshape(rows, _LANES)          # free

    align = _sublane_align(inputs.dtype, targets.dtype)
    row_tile = _choose_row_tile(rows, row_tile, align)
    grid = pl.cdiv(rows, row_tile)       # ragged last block masked in-kernel

    kernel = functools.partial(
        _focal_bce_kernel,
        alpha=float(alpha), gamma=float(gamma),
        ignore_half_labels=bool(ignore_half_labels),
        valid_rows=rows, row_tile=row_tile)

    # VMEM budget (f32, row_tile=4096): 2 inputs x 2 pipeline buffers x 2 MiB
    # = 8 MiB, plus elementwise/reduction intermediates.  48 MiB scoped limit
    # is a raise-only headroom bump that is safe on v5e/v6e/v7x.
    partials = pl.pallas_call(
        kernel,
        out_shape=jax.ShapeDtypeStruct((grid * _SUBLANES, _LANES), jnp.float32),
        grid_spec=pl.GridSpec(
            grid=(grid,),
            in_specs=[
                pl.BlockSpec((row_tile, _LANES), lambda i: (i, 0)),
                pl.BlockSpec((row_tile, _LANES), lambda i: (i, 0)),
            ],
            out_specs=pl.BlockSpec((_SUBLANES, _LANES), lambda i: (i, 0)),
        ),
        compiler_params=pltpu.CompilerParams(
            dimension_semantics=("parallel",),
            vmem_limit_bytes=48 * 1024 * 1024),
    )(x, t)

    # Final tree-reduce + mean in the wrapper (also better numerics than a
    # serially carried scalar).  Padding / masked rows contributed exactly 0.
    return jnp.sum(partials) / jnp.float32(total_n)


def _reference(inputs, targets, alpha=0.25, gamma=2.0, ignore_half_labels=False):
    p = inputs.astype(jnp.float32)
    t = targets.astype(jnp.float32)
    log_p = jnp.maximum(jnp.log(p), -100.0)
    log_1mp = jnp.maximum(jnp.log(1.0 - p), -100.0)
    bce = -(t * log_p + (1.0 - t) * log_1mp)
    loss = t * alpha * (1.0 - p) ** gamma * bce + (1.0 - t) * p ** gamma * bce
    if ignore_half_labels:
        loss = loss * (t != 0.5)
    return loss.mean()


if __name__ == "__main__":
    key = jax.random.PRNGKey(0)
    k1, k2, k3, k4, k5 = jax.random.split(key, 5)

    # Case 1: (batch, classes) = (16, 128) -- lane-aligned, zero-copy path.
    B, C = 16, 128
    inputs = jax.random.uniform(k1, (B, C), dtype=jnp.float32,
                                minval=1e-4, maxval=1.0 - 1e-4)
    targets = jax.random.bernoulli(k2, 0.3, (B, C)).astype(jnp.float32)

    out = focal_loss_bce(inputs, targets, alpha=0.25)
    out = jax.block_until_ready(out)
    ref = _reference(inputs, targets, alpha=0.25)
    np.testing.assert_allclose(np.asarray(out), np.asarray(ref),
                               rtol=1e-5, atol=1e-6)

    # Case 2: odd shape (lane pad + in-kernel row mask) + ignore_half_labels.
    B2, C2 = 7, 37
    inputs2 = jax.random.uniform(k3, (B2, C2), dtype=jnp.float32,
                                 minval=1e-4, maxval=1.0 - 1e-4)
    hard = jax.random.bernoulli(k4, 0.5, (B2, C2)).astype(jnp.float32)
    targets2 = jnp.where(jax.random.uniform(k5, (B2, C2)) < 0.2, 0.5, hard)

    out2 = focal_loss_bce(inputs2, targets2, alpha=0.5,
                          ignore_half_labels=True)
    out2 = jax.block_until_ready(out2)
    ref2 = _reference(inputs2, targets2, alpha=0.5, ignore_half_labels=True)
    np.testing.assert_allclose(np.asarray(out2), np.asarray(ref2),
                               rtol=1e-5, atol=1e-6)

    # Case 3: general (non-integer) gamma path, exp(gamma * clamped_log).
    out3 = focal_loss_bce(inputs2, targets2, alpha=0.25, gamma=1.5)
    out3 = jax.block_until_ready(out3)
    ref3 = _reference(inputs2, targets2, alpha=0.25, gamma=1.5)
    np.testing.assert_allclose(np.asarray(out3), np.asarray(ref3),
                               rtol=1e-4, atol=1e-6)

    print("KERNEL_OK")
</pallas_src>

<mosaic_0001>
module attributes {stable_mosaic.version = 11 : i64} {
  func.func @_focal_bce_kernel(%arg0: i32, %arg1: memref<8x128xf32, #tpu.memory_space<vmem>>, %arg2: memref<8x128xf32, #tpu.memory_space<vmem>>, %arg3: memref<8x128xf32, #tpu.memory_space<vmem>>) attributes {dimension_semantics = [#tpu.dimension_semantics<parallel>], iteration_bounds = array<i64: 2>, scalar_prefetch = 0 : i64, scratch_operands = 0 : i64, tpu.core_type = #tpu.core_type<tc>, window_params = [{transform_indices = @transform_0, window_bounds = array<i64: 8, 128>}, {transform_indices = @transform_1, window_bounds = array<i64: 8, 128>}, {transform_indices = @transform_2, window_bounds = array<i64: 8, 128>}]} {
    %c0 = arith.constant 0 : index
    %c0_0 = arith.constant 0 : index
    %0 = vector.load %arg1[%c0, %c0_0] : memref<8x128xf32, #tpu.memory_space<vmem>>, vector<8x128xf32>
    %c0_1 = arith.constant 0 : index
    %c0_2 = arith.constant 0 : index
    %1 = vector.load %arg2[%c0_1, %c0_2] : memref<8x128xf32, #tpu.memory_space<vmem>>, vector<8x128xf32>
    %cst = arith.constant 1.000000e+00 : f32
    %2 = vector.broadcast %cst : f32 to vector<8x128xf32>
    %3 = arith.subf %2, %0 : vector<8x128xf32>
    %cst_3 = arith.constant 1.000000e+00 : f32
    %4 = vector.broadcast %cst_3 : f32 to vector<8x128xf32>
    %5 = arith.subf %4, %1 : vector<8x128xf32>
    %6 = math.log %0 : vector<8x128xf32>
    %cst_4 = arith.constant -1.000000e+02 : f32
    %7 = vector.broadcast %cst_4 : f32 to vector<8x128xf32>
    %8 = arith.maximumf %6, %7 : vector<8x128xf32>
    %9 = math.log %3 : vector<8x128xf32>
    %cst_5 = arith.constant -1.000000e+02 : f32
    %10 = vector.broadcast %cst_5 : f32 to vector<8x128xf32>
    %11 = arith.maximumf %9, %10 : vector<8x128xf32>
    %12 = arith.subf %8, %11 : vector<8x128xf32>
    %13 = arith.mulf %1, %12 : vector<8x128xf32>
    %14 = arith.addf %11, %13 : vector<8x128xf32>
    %15 = arith.mulf %3, %3 : vector<8x128xf32>
    %16 = arith.mulf %0, %0 : vector<8x128xf32>
    %cst_6 = arith.constant -2.500000e-01 : f32
    %17 = vector.broadcast %cst_6 : f32 to vector<8x128xf32>
    %18 = arith.mulf %17, %15 : vector<8x128xf32>
    %19 = arith.mulf %1, %18 : vector<8x128xf32>
    %20 = arith.mulf %5, %16 : vector<8x128xf32>
    %21 = arith.subf %19, %20 : vector<8x128xf32>
    %22 = arith.mulf %21, %14 : vector<8x128xf32>
    %23 = vector.shape_cast %22 : vector<8x128xf32> to vector<1x8x128xf32>
    %24 = vector.shape_cast %23 : vector<1x8x128xf32> to vector<8x128xf32>
    %c0_7 = arith.constant 0 : index
    %c0_8 = arith.constant 0 : index
    %25 = vector.load %arg3[%c0_7, %c0_8] : memref<8x128xf32, #tpu.memory_space<vmem>>, vector<8x128xf32>
    tpu.vector_store %arg3[%c0_7, %c0_8], %24 {strides = array<i32>} : memref<8x128xf32, #tpu.memory_space<vmem>>, vector<8x128xf32>,
    return
  }
  func.func @transform_0(%arg0: i32) -> (i32, i32) {
    %c0_i32 = arith.constant 0 : i32
    %c0_i32_0 = arith.constant 0 : i32
    return %arg0, %c0_i32 : i32, i32
  }
  func.func @transform_1(%arg0: i32) -> (i32, i32) {
    %c0_i32 = arith.constant 0 : i32
    %c0_i32_0 = arith.constant 0 : i32
    return %arg0, %c0_i32 : i32, i32
  }
  func.func @transform_2(%arg0: i32) -> (i32, i32) {
    %c0_i32 = arith.constant 0 : i32
    %c0_i32_0 = arith.constant 0 : i32
    return %arg0, %c0_i32 : i32, i32
  }
}

</mosaic_0001>

<bundles_post_ra>
// kernel: tpu_custom_call.1
= control target key start
LH: loop header
LB: loop body
LE: loop exit
PB: predicated region body
PF: predicated region fallthrough
CT: control target
= control target key end

     0   :  { %7 = vsyncpa [#allocation3], 0  ;;  %s758_s0 = inlined_call_operand.hbm [shape: f32[16,128], index: 0, kind: input, shape index: {}]   ;;  %s759_s1 = inlined_call_operand.hbm [shape: f32[16,128], index: 1, kind: input, shape index: {}]   ;;  %s760_s2 = inlined_call_operand.hbm [shape: f32[16,128], index: 2, kind: output, shape index: {}]  }
   0x1   :  { %9 = vsyncpa [#allocation3 + $0x1], 0 }
   0x2   :  { %10 = vsyncpa [#allocation6], 0 }
   0x3   :  { %12 = vsyncpa [#allocation6 + $0x1], 0 }
   0x4   :  { %13 = vsyncpa [#allocation4], 0 }
   0x5   :  { %15 = vsyncpa [#allocation4 + $0x1], 0  ;;  %s544_s9 = smov 0   ;;  %s546_s10 = smov 0  }
   0x6   :  { %s548_s11 = smov 0   ;;  %s550_s12 = smov 0  }
   0x7 LB: > { %s565_s13 = sadd.s32 4294967295, %s524_s12   ;;  %s324_s14 = sadd.s32 4294967294, %s524_s12   ;;  %s524_s12 = sphi %s550_s12, %s779_s12   ;;  %s520_s11 = sphi %s548_s11, %s778_s11   ;;  %s516_s10 = sphi %s546_s10, %s777_s10   ;;  %s512_s9 = sphi %s544_s9, %s776_s9  }
   0x8   : > { %s569_s15 = sadd.s32 1, %s524_s12   ;;  %s28_s16 = sadd.s32 1, %s520_s11 }
   0x9   : > { %s25_s17 = ssub.s32 %s524_s12, %s569_s15  ;;  %p35_p0 = scmp.ne.s32.totalorder %s520_s11, %s516_s10 }
   0xa   : > { %p26_p1 = scmp.eq.s32.totalorder %s25_s17, 0  ;;  %p36_p2 = scmp.eq.s32.totalorder %s524_s12, 0 }
   0xb   : > { %p41_p3 = scmp.ne.s32.totalorder %s516_s10, %s512_s9  ;;  %p42_p4 = scmp.eq.s32.totalorder %s565_s13, 0 }
   0xc   : > { %s581_s18 = scalar_select %p26_p1, %s520_s11, %s28_s16  }
   0xd   : > { %p583_p5 = por %p36_p2, %p35_p0  ;;  %p587_p6 = por %p42_p4, %p41_p3 }
   0xe   : > { %p91_p7 = scmp.eq.s32.totalorder %s565_s13, 1  ;;  %p97_p8 = scmp.eq.s32.totalorder %s324_s14, 1 }
   0xf   : > { %s764_s20 = scalar_select %p587_p6, 1, 0 }
  0x10   : > { %p356_p10 = scmp.lt.s32.totalorder %s524_s12, 2  ;;  %p594_p11 = por %p91_p7, %p35_p0 }
  0x11   : > { %p598_p12 = por %p97_p8, %p41_p3  ;;  %s603_s23 = sand.u32 1, %s520_s11  }
  0x12   : > { %s765_s21 = scalar_select %p594_p11, 1, 0 }
  0x13   : > { %s766_s22 = scalar_select %p598_p12, 1, 0 }
  0x14   : > { %s328_s24 = sshll.u32 %s524_s12, 7  ;;  %s327_s25 = sshll.u32 %s603_s23, 3 }
  0x15   : > { %s612_s28 = scalar_lea.hbm %s758_s0, %s328_s24  ;;  %s121_s29 = scalar_lea.vmem [#allocation2], %s327_s25 }
  0x16   : > { %s128_s30 = sshll.u32 %s121_s29, 4  ;;  %p618_p13 = pnand %p356_p10, %p583_p5  ;;  %s622_s30 = int_to_ptr.vmem [resolvable:$true] %s128_s30 }
  0x17   : > { %s118_s4 = scalar_lea.sflag [#allocation3], %s603_s23  ;;  %s394_s5 = scalar_lea.hbm %s612_s28, 128 }
  0x18   : > { %p395_p2 = scmp.ne.s32.totalorder %s612_s28, %s394_s5  ;;  %p396_p3 = pneg %p618_p13 }
  0x19   : > { %s399_s8 = scalar_lea.hbm %s758_s0, 256  ;;  %p400_p5 = scmp.lt.u32.totalorder %s612_s28, %s758_s0 }
  0x1a   : > { %p397_p4 = pnand %p396_p3, %p395_p2  ;;  %p401_p8 = scmp.lt.u32.totalorder %s399_s8, %s394_s5 }
  0x1b   : > { %p403_p9 = scmp.lt.u32.totalorder %s394_s5, %s612_s28 }
  0x1c   : > { %p398_p7 = pneg %p397_p4  ;;  %p402_p10 = por %p401_p8, %p400_p5 }
  0x1e   : > { %p404_p0 = por %p403_p9, %p402_p10 }
  0x20   : > { %p405_p1 = pnand %p404_p0, %p398_p7 }
  0x22   : > { %408 = shalt.err (!%p405_p1)
}
  0x23   : > { %s409_s17 = scalar_lea.vmem %s622_s30, 128  ;;  %s526_s19 = smov [#allocation2]  }
  0x24   : > { %p410_p2 = scmp.ne.s32.totalorder %s622_s30, %s409_s17  ;;  %s414_s26 = sshll.u32 %s526_s19, 4  ;;  %s415_s26 = int_to_ptr.vmem [resolvable:$false] %s414_s26 }
  0x25   : > { %s416_s27 = scalar_lea.vmem %s415_s26, 256  ;;  %p417_p11 = scmp.lt.s32.totalorder %s622_s30, %s415_s26 }
  0x26   : > { %p412_p4 = pnand %p410_p2, %p396_p3  ;;  %p418_p5 = scmp.lt.s32.totalorder %s416_s27, %s409_s17 }
  0x28   : > { %p413_p12 = pneg %p412_p4  ;;  %p419_p8 = por %p418_p5, %p417_p11 }
  0x2a   : > { %p420_p9 = pnand %p419_p8, %p413_p12 }
  0x2c   : > { %423 = shalt.err (!%p420_p9)
}
  0x2d   : > { %348 = dma.hbm_to_vmem [thread:$0]  (!%p618_p13), %s612_s28, 128, %s622_s30, %s118_s4  }
  0x2e   : > { %p768_p0 = scmp.lt.s32.totalorder %s524_s12, 3  ;;  %p769_p1 = scmp.ge.s32.totalorder %s524_s12, 1 }
  0x2f   : > { %s665_s7 = scalar_lea.hbm %s759_s1, %s328_s24  ;;  %s139_s8 = scalar_lea.vmem [#allocation5], %s327_s25 }
  0x30   : > { %p656_p7 = pnand %p769_p1, %p768_p0  ;;  %s146_s14 = sshll.u32 %s139_s8, 4  ;;  %s147_s14 = int_to_ptr.vmem [resolvable:$true] %s146_s14 }
  0x31   : > { %s136_s28 = scalar_lea.sflag [#allocation6], %s603_s23  ;;  %s424_s30 = scalar_lea.hbm %s665_s7, 128 }
  0x32   : > { %s770_s29 = scalar_select %p656_p7, 1, 0 }
  0x33   : > { %p425_p11 = scmp.ne.s32.totalorder %s665_s7, %s424_s30  ;;  %s429_s24 = scalar_lea.hbm %s759_s1, 256 }
  0x34   : > { %p430_p2 = scmp.lt.u32.totalorder %s665_s7, %s759_s1  ;;  %p431_p4 = scmp.lt.u32.totalorder %s429_s24, %s424_s30 }
  0x35   : > { %p427_p12 = pnand %p425_p11, %p396_p3  ;;  %p433_p8 = scmp.lt.u32.totalorder %s424_s30, %s665_s7 }
  0x36   : > { %p432_p5 = por %p431_p4, %p430_p2 }
  0x37   : > { %p428_p10 = pneg %p427_p12 }
  0x38   : > { %p434_p9 = por %p433_p8, %p432_p5 }
  0x3a   : > { %p435_p0 = pnand %p434_p9, %p428_p10 }
  0x3c   : > { %438 = shalt.err (!%p435_p0)
}
  0x3d   : > { %s439_s23 = scalar_lea.vmem %s147_s14, 128  ;;  %s527_s25 = smov [#allocation5]  }
  0x3e   : > { %p440_p1 = scmp.ne.s32.totalorder %s147_s14, %s439_s23  ;;  %s444_s26 = sshll.u32 %s527_s25, 4  ;;  %s445_s26 = int_to_ptr.vmem [resolvable:$false] %s444_s26 }
  0x3f   : > { %s446_s27 = scalar_lea.vmem %s445_s26, 256  ;;  %p447_p6 = scmp.lt.s32.totalorder %s147_s14, %s445_s26 }
  0x40   : > { %p442_p11 = pnand %p440_p1, %p396_p3  ;;  %p448_p7 = scmp.lt.s32.totalorder %s446_s27, %s439_s23 }
  0x42   : > { %p443_p12 = pneg %p442_p11  ;;  %p449_p2 = por %p448_p7, %p447_p6 }
  0x44   : > { %p450_p4 = pnand %p449_p2, %p443_p12 }
  0x46   : > { %453 = shalt.err (!%p450_p4)
}
  0x47   : > { %351 = dma.hbm_to_vmem [thread:$0]  (!%p618_p13), %s665_s7, 128, %s147_s14, %s136_s28  }
  0x48   : > { %p771_p10 = scmp.ne.s32.totalorder %s770_s29, 0 }
  0x49   : > { %s692_s5 = sand.u32 (!%p771_p10), 1, %s516_s10   ;;  %p772_p6 = scmp.ne.s32.totalorder (!%p771_p10), %s764_s20, 0 }
  0x4a   : > { %155 = sbr.rel (%p771_p10) target bundleno = 124 (0x7c), region = 28  ;;  %s695_s6 = sshll.u32 (!%p771_p10), %s692_s5, 3 }
  0x4b   : > { %s158_s8 = scalar_lea.sflag (!%p771_p10), [#allocation3], %s692_s5  ;;  %s161_s30 = scalar_lea.vmem (!%p771_p10), [#allocation2], %s695_s6 }
  0x51   : > { %499 = dma.done.wait (%p772_p6), %s158_s8, 128  }
  0x52   : > { %501 = vsyncadd (%p772_p6), %s158_s8, 4294967168  ;;  %s167_s3 = scalar_lea.sflag [#allocation6], %s692_s5  ;;  %s170_s29 = scalar_lea.vmem [#allocation5], %s695_s6 }
  0x53   : > { %503 = dma.done.wait (%p772_p6), %s167_s3, 128  }
  0x54   : > { %505 = vsyncadd (%p772_p6), %s167_s3, 4294967168  ;;  %v196_v0 = vld [vmem:[%s161_s30] sm:$0xff]  ;;  %v197_v3 = vld [vmem:[%s170_s29] sm:$0xff]  ;;  %s195_s20 = scalar_lea.vmem [#allocation7], %s695_s6  ;;  %s336_s14 = sshll.u32 %s565_s13, 7 }
  0x55   : > { %v198_v1 = vsub.f32 1.0, %v196_v0  ;;  %390 = vlog2.f32 %v196_v0  ;;  %v199_v5 = vsub.f32 1.0, %v197_v3  ;;  %v210_v7 = vmul.f32 %v196_v0, %v196_v0  ;;  %s231_s7 = sshll.u32 %s195_s20, 4  ;;  %s716_s16 = scalar_lea.hbm %s760_s2, %s336_s14  ;;  %s711_s7 = int_to_ptr.vmem [resolvable:$true] %s231_s7 }
  0x56   : > { %s218_s24 = scalar_lea.sflag [#allocation4], %s692_s5  ;;  %s454_s17 = scalar_lea.vmem %s711_s7, 128 }
  0x57   : > { %392 = vlog2.f32 %v198_v1  ;;  %v209_v2 = vmul.f32 %v198_v1, %v198_v1  ;;  %v213_v14 = vmul.f32 %v210_v7, %v199_v5  ;;  %p455_p13 = scmp.ne.s32.totalorder %s711_s7, %s454_s17  ;;  %p773_p3 = scmp.ne.s32.totalorder %s765_s21, 0 }
  0x58   : > { %s528_s13 = smov [#allocation7]  }
  0x59   : > { %v211_v8 = vmul.f32 -0.25, %v209_v2  ;;  %p456_p7 = pnand %p455_p13, %p773_p3  ;;  %s458_s19 = sshll.u32 %s528_s13, 4  ;;  %s459_s19 = int_to_ptr.vmem [resolvable:$false] %s458_s19 }
  0x5a   : > { %s460_s23 = scalar_lea.vmem %s459_s19, 256  ;;  %p461_p8 = scmp.lt.s32.totalorder %s711_s7, %s459_s19 }
  0x5b   : > { %v212_v13 = vmul.f32 %v211_v8, %v197_v3  ;;  %p457_p5 = pneg %p456_p7  ;;  %p462_p9 = scmp.lt.s32.totalorder %s460_s23, %s454_s17 }
  0x5d   : > { %v214_v17 = vsub.f32 %v212_v13, %v213_v14  ;;  %p463_p0 = por %p462_p9, %p461_p8 }
  0x5f   : > { %v391_v4 = vpop.eup %390  ;;  %p464_p1 = pnand %p463_p0, %p457_p5 }
  0x60   : > { %v201_v6 = vmul.f32 0.6931472, %v391_v4 }
  0x61   : > { %v393_v9 = vpop.eup %392 }
  0x62   : > { %v202_v10 = vmax.f32 %v201_v6, -100.0  ;;  %v204_v11 = vmul.f32 0.6931472, %v393_v9 }
  0x64   : > { %v205_v12 = vmax.f32 %v204_v11, -100.0 }
  0x66   : > { %v206_v15 = vsub.f32 %v202_v10, %v205_v12 }
  0x68   : > { %v207_v16 = vmul.f32 %v206_v15, %v197_v3 }
  0x6a   : > { %v208_v18 = vadd.f32 %v207_v16, %v205_v12 }
  0x6c   : > { %v215_v19 = vmul.f32 %v214_v17, %v208_v18 }
  0x6e   : > { %216 = vst [vmem:[%s195_s20] sm:$0xff] %v215_v19 }
  0x6f   : > { %467 = shalt.err (!%p464_p1)
}
  0x70   : > { %s468_s25 = scalar_lea.hbm %s716_s16, 128  ;;  %s472_s5 = scalar_lea.hbm %s760_s2, 256 }
  0x71   : > { %p469_p11 = scmp.ne.s32.totalorder %s716_s16, %s468_s25  ;;  %p473_p4 = scmp.lt.u32.totalorder %s716_s16, %s760_s2 }
  0x72   : > { %p474_p10 = scmp.lt.u32.totalorder %s472_s5, %s468_s25  ;;  %p476_p13 = scmp.lt.u32.totalorder %s468_s25, %s716_s16 }
  0x73   : > { %p470_p12 = pnand %p469_p11, %p773_p3 }
  0x74   : > { %p475_p6 = por %p474_p10, %p473_p4 }
  0x75   : > { %p471_p2 = pneg %p470_p12 }
  0x76   : > { %p477_p7 = por %p476_p13, %p475_p6 }
  0x78   : > { %p478_p5 = pnand %p477_p7, %p471_p2 }
  0x7a   : > { %481 = shalt.err (!%p478_p5)
}
  0x7b   : > { %343 = dma.vmem_to_hbm [thread:$0]  (%p773_p3), %s711_s7, 128, %s716_s16, %s218_s24  }
  0x7c PF: > { %s243_s30 = sand.u32 1, %s512_s9   ;;  %p774_p8 = scmp.ne.s32.totalorder %s766_s22, 0 }
  0x7d   : > { %p775_p9 = scmp.ge.s32.totalorder %s524_s12, 2  ;;  %s244_s3 = scalar_lea.sflag [#allocation4], %s243_s30 }
  0x7f   : > { %p353_p0 = pnand %p775_p9, %p774_p8 }
  0x81   : > { %507 = dma.done.wait (!%p353_p0), %s244_s3, 128  }
  0x82   : > { %509 = vsyncadd (!%p353_p0), %s244_s3, 4294967168  ;;  %p18_p1 = scmp.ge.s32.totalorder %s569_s15, 4   ;;  %s776_s9 = smov %s516_s10 }
  0x83   : > { %s777_s10 = smov %s520_s11  ;;  %s778_s11 = smov %s581_s18 }
  0x84   : > { %s779_s12 = smov %s569_s15  ;;  %20 = sbr.rel (!%p18_p1) target bundleno = 7 (0x7), region = 86 }
  0x8b   :  { %249 = vsyncpa [#allocation3], 1 }
  0x8c   :  { %251 = vsyncpa [#allocation3 + $0x1], 1 }
  0x8d   :  { %252 = vsyncpa [#allocation6], 1 }
  0x8e   :  { %254 = vsyncpa [#allocation6 + $0x1], 1 }
  0x8f   :  { %255 = vsyncpa [#allocation4], 1 }
  0x90   :  { %257 = vsyncpa [#allocation4 + $0x1], 1 }

</bundles_post_ra>
